<compile_context>
chip_gen: v7x
topology: tpu7x:2x2x1
jax: 0.10.0
libtpu: 0.0.40
codegen_flags: <defaults>
</compile_context>

<pallas_src>
import functools

import jax
import jax.numpy as jnp
from jax import lax
from jax.experimental import pallas as pl
from jax.experimental.pallas import tpu as pltpu


def _cdiv(a, b):
    return (a + b - 1) // b


def _round_up(x, m):
    return _cdiv(x, m) * m


# --------------------------------------------------------------------------------------
# In-kernel helper: per-voxel channel mix on one (2C, strip) strip.
# --------------------------------------------------------------------------------------
def _conv_strip(x, w_cols, bias):
    """y[r, p] = sum_j w_cols[j][r] * x[j, p] + bias[r].

    The packed 8x8 weight is block-structured (even output rows only mix even input rows),
    but each term is one full-vreg broadcast-FMA regardless, so the packed conv costs the
    same as the unpacked one while all downstream elementwise ops run on fully-packed vregs.
    Two independent partial sums shorten the add dependency chain.
    (On v7x, jnp.dot(w8, x) on the MXU would free these VALU/XLU slots entirely; measure
    both variants if pass 2 profiles VALU-bound there.)"""
    n = len(w_cols)
    y0 = w_cols[0] * x[0:1, :]
    y1 = w_cols[1] * x[1:2, :]
    for j in range(2, n, 2):
        y0 = y0 + w_cols[j] * x[j:j + 1, :]
        y1 = y1 + w_cols[j + 1] * x[j + 1:j + 2, :]
    return y0 + y1 + bias


# --------------------------------------------------------------------------------------
# Kernel 1: conv (never materialized) + per-channel sum / sum-of-squares lane partials.
# --------------------------------------------------------------------------------------
def conv_stats_kernel(x_ref, w_ref, b_ref, sum_ref, ssq_ref, *, n_strips, strip):
    # Zero the per-(batch, spatial-split) accumulators at the first tile of the inner axis.
    @pl.when(pl.program_id(2) == 0)
    def _():
        sum_ref[...] = jnp.zeros_like(sum_ref)
        ssq_ref[...] = jnp.zeros_like(ssq_ref)

    w8 = w_ref[...]                       # (2C, 2C), resident
    bias = b_ref[...]                     # (2C, 1),  resident
    w_cols = tuple(w8[:, j:j + 1] for j in range(w8.shape[1]))   # hoisted out of the loop
    rows = x_ref.shape[0]

    def body(i, carry):
        s_acc, q_acc = carry
        off = pl.multiple_of(i * strip, strip)
        xs = x_ref[:, pl.ds(off, strip)]              # (2C, strip) f32
        y = _conv_strip(xs, w_cols, bias)             # conv output, stays in vregs
        return s_acc + y, q_acc + y * y

    zero = jnp.zeros((rows, strip), jnp.float32)
    unroll = 2 if n_strips % 2 == 0 else 1
    s_acc, q_acc = lax.fori_loop(0, n_strips, body, (zero, zero), unroll=unroll)

    # Fold the strip width down to 128 lanes; the lane partials are collapsed in the wrapper.
    s128 = s_acc[:, 0:128]
    q128 = q_acc[:, 0:128]
    for j in range(1, strip // 128):
        s128 = s128 + s_acc[:, j * 128:(j + 1) * 128]
        q128 = q128 + q_acc[:, j * 128:(j + 1) * 128]
    sum_ref[...] += s128
    ssq_ref[...] += q128


# --------------------------------------------------------------------------------------
# Kernel 2: fused conv (BN folded in) + sigmoid + gating multiply.
# --------------------------------------------------------------------------------------
def conv_bn_sigmoid_mul_kernel(x_ref, w_ref, b_ref, o_ref, *, n_strips, strip):
    w8 = w_ref[...]
    bias = b_ref[...]
    w_cols = tuple(w8[:, j:j + 1] for j in range(w8.shape[1]))

    def body(i, carry):
        off = pl.multiple_of(i * strip, strip)
        xs = x_ref[:, pl.ds(off, strip)]
        a = _conv_strip(xs, w_cols, bias)             # BN scale/shift pre-folded
        att = 0.5 * jnp.tanh(0.5 * a) + 0.5           # sigmoid via one EUP tanh + 2 VALU ops
        o_ref[:, pl.ds(off, strip)] = (xs * att).astype(o_ref.dtype)
        return carry

    unroll = 2 if n_strips % 2 == 0 else 1
    lax.fori_loop(0, n_strips, body, 0, unroll=unroll)


# --------------------------------------------------------------------------------------
# Wrapper
# --------------------------------------------------------------------------------------
def attention_block_forward(x, w, b, gamma, beta, *, eps=1e-5,
                            tile_lanes=32768, strip=512, n_split=2):
    """x: (N, C, D, H, W) f32.  Returns x * sigmoid(BN_train(conv1x1x1(x))).

    tile_lanes: target packed-lane tile width (32768 -> 1 MiB x-tile for C=4 f32).
    strip:      inner-loop strip width (lanes), multiple of 128.
    n_split:    spatial parallel split of the stats pass (keeps both v7x cores busy at N=1)."""
    if x.dtype != jnp.float32:
        raise NotImplementedError("f32 only (bf16 needs different packing / accumulation)")
    N, C, D, H, W = x.shape
    S = D * H * W
    P = N * S
    C2 = 2 * C

    # ---- packed tiling: (N, C, S) -> (N, 2C, Sp), Sp a multiple of strip that covers ceil(S/2) ----
    tile_lanes = max(strip, (tile_lanes // strip) * strip)
    sp_needed = _cdiv(S, 2)
    nt_total = max(n_split, _cdiv(sp_needed, tile_lanes))
    nt_total = n_split * _cdiv(nt_total, n_split)          # even split across n_split
    ts2 = _round_up(_cdiv(sp_needed, nt_total), strip)      # lane-dense tile width (>= strip)
    nt_per_split = nt_total // n_split
    Sp = nt_total * ts2
    S_pad = 2 * Sp
    n_strips = ts2 // strip

    x3 = x.reshape(N, C, S)                 # free: NCDHW is already contiguous as (N, C, S)
    if S_pad != S:
        # Extra HBM pass only for non-conforming shapes; pad voxels are exact zeros.
        x3 = jnp.pad(x3, ((0, 0), (0, 0), (0, S_pad - S)))
    xp = x3.reshape(N, C2, Sp)              # free row-major repack: channel c -> rows 2c, 2c+1

    # ---- pack the 1x1x1 conv params into the (2C, 2C) block-structured mix ----
    eye2 = jnp.eye(2, dtype=w.dtype)

    def pack_w(wm):                          # W8[2o+h, 2c+k] = w[o, c] * (h == k)
        return jnp.einsum("oc,hk->ohck", wm, eye2).reshape(C2, C2)

    def pack_b(bv):                          # b8[2o+h] = b[o]
        return jnp.repeat(bv, 2).reshape(C2, 1)

    w8 = pack_w(w)
    b8 = pack_b(b)

    grid = (N, n_split, nt_per_split)
    x_spec = pl.BlockSpec((None, C2, ts2), lambda n, sp, i: (n, 0, sp * nt_per_split + i))
    # Optional: pipeline_mode=pl.Buffered(3) on x_spec if DMA is still exposed; not needed at 1 MiB tiles.
    w_spec = pl.BlockSpec((C2, C2), lambda n, sp, i: (0, 0))       # resident
    b_spec = pl.BlockSpec((C2, 1), lambda n, sp, i: (0, 0))        # resident
    acc_spec = pl.BlockSpec((None, None, C2, 128), lambda n, sp, i: (n, sp, 0, 0))
    cparams = dict(vmem_limit_bytes=32 * 1024 * 1024)              # explicit; safe on v5e/v6e/v7x

    # ---- pass 1: batch statistics of the conv output (per-(batch, split) lane partials) ----
    sum_p, ssq_p = pl.pallas_call(
        functools.partial(conv_stats_kernel, n_strips=n_strips, strip=strip),
        out_shape=(
            jax.ShapeDtypeStruct((N, n_split, C2, 128), jnp.float32),
            jax.ShapeDtypeStruct((N, n_split, C2, 128), jnp.float32),
        ),
        grid_spec=pltpu.PrefetchScalarGridSpec(
            num_scalar_prefetch=0,
            grid=grid,
            in_specs=[x_spec, w_spec, b_spec],
            out_specs=(acc_spec, acc_spec),
        ),
        compiler_params=pltpu.CompilerParams(
            dimension_semantics=("parallel", "parallel", "arbitrary"), **cparams),
    )(xp, w8, b8)

    # ---- tiny wrapper math: collapse partials, remove pad contribution, fold BN into conv ----
    ssum = sum_p.sum(axis=(0, 1, 3)).reshape(C, 2).sum(axis=1)     # rows 2c + 2c+1 -> channel c
    ssq = ssq_p.sum(axis=(0, 1, 3)).reshape(C, 2).sum(axis=1)
    n_pad = N * (S_pad - S)
    if n_pad:
        ssum = ssum - n_pad * b            # pad voxels (x == 0) contribute exactly y = b
        ssq = ssq - n_pad * (b * b)
    mean = ssum / P
    var = jnp.maximum(ssq / P - mean * mean, 0.0)   # biased variance (PyTorch BN normalization)
    scale = gamma * lax.rsqrt(var + eps)
    shift = beta - mean * scale
    w_fold8 = pack_w(w * scale[:, None])
    b_fold8 = pack_b(b * scale + shift)

    # ---- pass 2: fused conv + BN + sigmoid + gate; fully parallel streaming pass ----
    out_p = pl.pallas_call(
        functools.partial(conv_bn_sigmoid_mul_kernel, n_strips=n_strips, strip=strip),
        out_shape=jax.ShapeDtypeStruct((N, C2, Sp), x.dtype),
        grid_spec=pltpu.PrefetchScalarGridSpec(
            num_scalar_prefetch=0,
            grid=grid,
            in_specs=[x_spec, w_spec, b_spec],
            out_specs=pl.BlockSpec((None, C2, ts2),
                                   lambda n, sp, i: (n, 0, sp * nt_per_split + i)),
        ),
        compiler_params=pltpu.CompilerParams(
            dimension_semantics=("parallel", "parallel", "parallel"), **cparams),
    )(xp, w_fold8, b_fold8)

    out3 = out_p.reshape(N, C, S_pad)      # exact inverse of the packing reshape (free)
    if S_pad != S:
        out3 = out3[:, :, :S]
    return out3.reshape(N, C, D, H, W)


def reference_forward(x, w, b, gamma, beta, eps=1e-5):
    """Pure-JAX reference matching PyTorch AttentionBlock.forward (training-mode BN)."""
    y = jnp.einsum("oc,ncdhw->nodhw", w, x) + b[None, :, None, None, None]
    mean = y.mean(axis=(0, 2, 3, 4))
    var = ((y - mean[None, :, None, None, None]) ** 2).mean(axis=(0, 2, 3, 4))
    yn = (y - mean[None, :, None, None, None]) / jnp.sqrt(var + eps)[None, :, None, None, None]
    yn = yn * gamma[None, :, None, None, None] + beta[None, :, None, None, None]
    return x * jax.nn.sigmoid(yn)


if __name__ == "__main__":
    key = jax.random.PRNGKey(0)
    kx, kw, kb, kg, kbeta = jax.random.split(key, 5)

    N, C, D, H, W = 2, 4, 8, 16, 16
    x = jax.random.normal(kx, (N, C, D, H, W), dtype=jnp.float32)

    # Deterministic synthetic parameters (Conv3d 1x1x1 weight/bias, BN gamma/beta).
    w = jax.random.normal(kw, (C, C), dtype=jnp.float32) * 0.5
    b = jax.random.normal(kb, (C,), dtype=jnp.float32) * 0.1
    gamma = 1.0 + 0.1 * jax.random.normal(kg, (C,), dtype=jnp.float32)
    beta = 0.1 * jax.random.normal(kbeta, (C,), dtype=jnp.float32)

    out = jax.block_until_ready(attention_block_forward(x, w, b, gamma, beta))
    ref = reference_forward(x, w, b, gamma, beta)
    assert out.shape == x.shape and out.dtype == x.dtype
    assert jnp.allclose(out, ref, rtol=1e-4, atol=1e-5), "mismatch vs reference (main shape)"

    # Ragged shape (S = 5*6*7 = 210, N = 1): exercises zero-padding + analytic stats correction
    # and the spatial parallel split with a single batch element.
    x2 = jax.random.normal(kx, (1, C, 5, 6, 7), dtype=jnp.float32)
    out2 = jax.block_until_ready(attention_block_forward(x2, w, b, gamma, beta))
    ref2 = reference_forward(x2, w, b, gamma, beta)
    assert out2.shape == x2.shape
    assert jnp.allclose(out2, ref2, rtol=1e-4, atol=1e-5), "mismatch vs reference (ragged shape)"

    print("KERNEL_OK")
</pallas_src>

<mosaic_0001>
module attributes {stable_mosaic.version = 11 : i64} {
  func.func @conv_stats_kernel(%arg0: i32, %arg1: i32, %arg2: i32, %arg3: memref<1x8x512xf32, #tpu.memory_space<vmem>>, %arg4: memref<8x8xf32, #tpu.memory_space<vmem>>, %arg5: memref<8x1xf32, #tpu.memory_space<vmem>>, %arg6: memref<1x1x8x128xf32, #tpu.memory_space<vmem>>, %arg7: memref<1x1x8x128xf32, #tpu.memory_space<vmem>>) attributes {dimension_semantics = [#tpu.dimension_semantics<parallel>, #tpu.dimension_semantics<parallel>, #tpu.dimension_semantics<arbitrary>], iteration_bounds = array<i64: 2, 2, 1>, scalar_prefetch = 0 : i64, scratch_operands = 0 : i64, tpu.core_type = #tpu.core_type<tc>, window_params = [{transform_indices = @transform_0, window_bounds = array<i64: 1, 8, 512>}, {pipeline_mode = #tpu.pipeline_mode<synchronous>, transform_indices = @transform_1, window_bounds = array<i64: 8, 8>}, {pipeline_mode = #tpu.pipeline_mode<synchronous>, transform_indices = @transform_2, window_bounds = array<i64: 8, 1>}, {transform_indices = @transform_3, window_bounds = array<i64: 1, 1, 8, 128>}, {transform_indices = @transform_4, window_bounds = array<i64: 1, 1, 8, 128>}]} {
    %c0_i32 = arith.constant 0 : i32
    %0 = arith.cmpi eq, %arg2, %c0_i32 : i32
    %1 = arith.extui %0 : i1 to i32
    %c0_i32_0 = arith.constant 0 : i32
    %2 = arith.cmpi ne, %1, %c0_i32_0 : i32
    scf.if %2 {
      %cst_23 = arith.constant 0.000000e+00 : f32
      %89 = vector.broadcast %cst_23 : f32 to vector<8x128xf32>
      %c0_24 = arith.constant 0 : index
      %c0_25 = arith.constant 0 : index
      %c0_26 = arith.constant 0 : index
      %c0_27 = arith.constant 0 : index
      %90 = vector.load %arg6[%c0_24, %c0_25, %c0_26, %c0_27] : memref<1x1x8x128xf32, #tpu.memory_space<vmem>>, vector<1x1x8x128xf32>
      %91 = vector.shape_cast %90 : vector<1x1x8x128xf32> to vector<8x128xf32>
      %92 = vector.shape_cast %89 : vector<8x128xf32> to vector<1x1x8x128xf32>
      tpu.vector_store %arg6[%c0_24, %c0_25, %c0_26, %c0_27], %92 {strides = array<i32>} : memref<1x1x8x128xf32, #tpu.memory_space<vmem>>, vector<1x1x8x128xf32>,
      %cst_28 = arith.constant 0.000000e+00 : f32
      %93 = vector.broadcast %cst_28 : f32 to vector<8x128xf32>
      %c0_29 = arith.constant 0 : index
      %c0_30 = arith.constant 0 : index
      %c0_31 = arith.constant 0 : index
      %c0_32 = arith.constant 0 : index
      %94 = vector.load %arg7[%c0_29, %c0_30, %c0_31, %c0_32] : memref<1x1x8x128xf32, #tpu.memory_space<vmem>>, vector<1x1x8x128xf32>
      %95 = vector.shape_cast %94 : vector<1x1x8x128xf32> to vector<8x128xf32>
      %96 = vector.shape_cast %93 : vector<8x128xf32> to vector<1x1x8x128xf32>
      tpu.vector_store %arg7[%c0_29, %c0_30, %c0_31, %c0_32], %96 {strides = array<i32>} : memref<1x1x8x128xf32, #tpu.memory_space<vmem>>, vector<1x1x8x128xf32>,
    } else {
    }
    %c0 = arith.constant 0 : index
    %c0_1 = arith.constant 0 : index
    %3 = vector.load %arg4[%c0, %c0_1] : memref<8x8xf32, #tpu.memory_space<vmem>>, vector<8x8xf32>
    %c0_2 = arith.constant 0 : index
    %c0_3 = arith.constant 0 : index
    %4 = vector.load %arg5[%c0_2, %c0_3] : memref<8x1xf32, #tpu.memory_space<vmem>>, vector<8x1xf32>
    %5 = vector.extract_strided_slice %3 {offsets = [0, 0], sizes = [8, 1], strides = [1, 1]} : vector<8x8xf32> to vector<8x1xf32>
    %6 = vector.extract_strided_slice %3 {offsets = [0, 1], sizes = [8, 1], strides = [1, 1]} : vector<8x8xf32> to vector<8x1xf32>
    %7 = vector.extract_strided_slice %3 {offsets = [0, 2], sizes = [8, 1], strides = [1, 1]} : vector<8x8xf32> to vector<8x1xf32>
    %8 = vector.extract_strided_slice %3 {offsets = [0, 3], sizes = [8, 1], strides = [1, 1]} : vector<8x8xf32> to vector<8x1xf32>
    %9 = vector.extract_strided_slice %3 {offsets = [0, 4], sizes = [8, 1], strides = [1, 1]} : vector<8x8xf32> to vector<8x1xf32>
    %10 = vector.extract_strided_slice %3 {offsets = [0, 5], sizes = [8, 1], strides = [1, 1]} : vector<8x8xf32> to vector<8x1xf32>
    %11 = vector.extract_strided_slice %3 {offsets = [0, 6], sizes = [8, 1], strides = [1, 1]} : vector<8x8xf32> to vector<8x1xf32>
    %12 = vector.extract_strided_slice %3 {offsets = [0, 7], sizes = [8, 1], strides = [1, 1]} : vector<8x8xf32> to vector<8x1xf32>
    %cst = arith.constant 0.000000e+00 : f32
    %13 = vector.broadcast %cst : f32 to vector<8x512xf32>
    %c0_i32_4 = arith.constant 0 : i32
    %c512_i32 = arith.constant 512 : i32
    %14 = arith.muli %c0_i32_4, %c512_i32 : i32
    %15 = tpu.assume_multiple %14, 512 : i32
    %c0_5 = arith.constant 0 : index
    %c0_6 = arith.constant 0 : index
    %16 = arith.index_cast %15 : i32 to index
    %17 = vector.load %arg3[%c0_5, %c0_6, %16] : memref<1x8x512xf32, #tpu.memory_space<vmem>>, vector<1x8x512xf32>
    %18 = vector.shape_cast %17 : vector<1x8x512xf32> to vector<8x512xf32>
    %19 = vector.extract_strided_slice %18 {offsets = [0, 0], sizes = [1, 512], strides = [1, 1]} : vector<8x512xf32> to vector<1x512xf32>
    %20 = vector.broadcast %5 : vector<8x1xf32> to vector<8x512xf32>
    %21 = vector.broadcast %19 : vector<1x512xf32> to vector<8x512xf32>
    %22 = arith.mulf %20, %21 : vector<8x512xf32>
    %23 = vector.extract_strided_slice %18 {offsets = [1, 0], sizes = [1, 512], strides = [1, 1]} : vector<8x512xf32> to vector<1x512xf32>
    %24 = vector.broadcast %6 : vector<8x1xf32> to vector<8x512xf32>
    %25 = vector.broadcast %23 : vector<1x512xf32> to vector<8x512xf32>
    %26 = arith.mulf %24, %25 : vector<8x512xf32>
    %27 = vector.extract_strided_slice %18 {offsets = [2, 0], sizes = [1, 512], strides = [1, 1]} : vector<8x512xf32> to vector<1x512xf32>
    %28 = vector.broadcast %7 : vector<8x1xf32> to vector<8x512xf32>
    %29 = vector.broadcast %27 : vector<1x512xf32> to vector<8x512xf32>
    %30 = arith.mulf %28, %29 : vector<8x512xf32>
    %31 = arith.addf %22, %30 : vector<8x512xf32>
    %32 = vector.extract_strided_slice %18 {offsets = [3, 0], sizes = [1, 512], strides = [1, 1]} : vector<8x512xf32> to vector<1x512xf32>
    %33 = vector.broadcast %8 : vector<8x1xf32> to vector<8x512xf32>
    %34 = vector.broadcast %32 : vector<1x512xf32> to vector<8x512xf32>
    %35 = arith.mulf %33, %34 : vector<8x512xf32>
    %36 = arith.addf %26, %35 : vector<8x512xf32>
    %37 = vector.extract_strided_slice %18 {offsets = [4, 0], sizes = [1, 512], strides = [1, 1]} : vector<8x512xf32> to vector<1x512xf32>
    %38 = vector.broadcast %9 : vector<8x1xf32> to vector<8x512xf32>
    %39 = vector.broadcast %37 : vector<1x512xf32> to vector<8x512xf32>
    %40 = arith.mulf %38, %39 : vector<8x512xf32>
    %41 = arith.addf %31, %40 : vector<8x512xf32>
    %42 = vector.extract_strided_slice %18 {offsets = [5, 0], sizes = [1, 512], strides = [1, 1]} : vector<8x512xf32> to vector<1x512xf32>
    %43 = vector.broadcast %10 : vector<8x1xf32> to vector<8x512xf32>
    %44 = vector.broadcast %42 : vector<1x512xf32> to vector<8x512xf32>
    %45 = arith.mulf %43, %44 : vector<8x512xf32>
    %46 = arith.addf %36, %45 : vector<8x512xf32>
    %47 = vector.extract_strided_slice %18 {offsets = [6, 0], sizes = [1, 512], strides = [1, 1]} : vector<8x512xf32> to vector<1x512xf32>
    %48 = vector.broadcast %11 : vector<8x1xf32> to vector<8x512xf32>
    %49 = vector.broadcast %47 : vector<1x512xf32> to vector<8x512xf32>
    %50 = arith.mulf %48, %49 : vector<8x512xf32>
    %51 = arith.addf %41, %50 : vector<8x512xf32>
    %52 = vector.extract_strided_slice %18 {offsets = [7, 0], sizes = [1, 512], strides = [1, 1]} : vector<8x512xf32> to vector<1x512xf32>
    %53 = vector.broadcast %12 : vector<8x1xf32> to vector<8x512xf32>
    %54 = vector.broadcast %52 : vector<1x512xf32> to vector<8x512xf32>
    %55 = arith.mulf %53, %54 : vector<8x512xf32>
    %56 = arith.addf %46, %55 : vector<8x512xf32>
    %57 = arith.addf %51, %56 : vector<8x512xf32>
    %58 = vector.broadcast %4 : vector<8x1xf32> to vector<8x512xf32>
    %59 = arith.addf %57, %58 : vector<8x512xf32>
    %60 = arith.addf %13, %59 : vector<8x512xf32>
    %61 = arith.mulf %59, %59 : vector<8x512xf32>
    %62 = arith.addf %13, %61 : vector<8x512xf32>
    %c1_i32 = arith.constant 1 : i32
    %63 = vector.extract_strided_slice %60 {offsets = [0, 0], sizes = [8, 128], strides = [1, 1]} : vector<8x512xf32> to vector<8x128xf32>
    %64 = vector.extract_strided_slice %62 {offsets = [0, 0], sizes = [8, 128], strides = [1, 1]} : vector<8x512xf32> to vector<8x128xf32>
    %65 = vector.extract_strided_slice %60 {offsets = [0, 128], sizes = [8, 128], strides = [1, 1]} : vector<8x512xf32> to vector<8x128xf32>
    %66 = arith.addf %63, %65 : vector<8x128xf32>
    %67 = vector.extract_strided_slice %62 {offsets = [0, 128], sizes = [8, 128], strides = [1, 1]} : vector<8x512xf32> to vector<8x128xf32>
    %68 = arith.addf %64, %67 : vector<8x128xf32>
    %69 = vector.extract_strided_slice %60 {offsets = [0, 256], sizes = [8, 128], strides = [1, 1]} : vector<8x512xf32> to vector<8x128xf32>
    %70 = arith.addf %66, %69 : vector<8x128xf32>
    %71 = vector.extract_strided_slice %62 {offsets = [0, 256], sizes = [8, 128], strides = [1, 1]} : vector<8x512xf32> to vector<8x128xf32>
    %72 = arith.addf %68, %71 : vector<8x128xf32>
    %73 = vector.extract_strided_slice %60 {offsets = [0, 384], sizes = [8, 128], strides = [1, 1]} : vector<8x512xf32> to vector<8x128xf32>
    %74 = arith.addf %70, %73 : vector<8x128xf32>
    %75 = vector.extract_strided_slice %62 {offsets = [0, 384], sizes = [8, 128], strides = [1, 1]} : vector<8x512xf32> to vector<8x128xf32>
    %76 = arith.addf %72, %75 : vector<8x128xf32>
    %c0_7 = arith.constant 0 : index
    %c0_8 = arith.constant 0 : index
    %c0_9 = arith.constant 0 : index
    %c0_10 = arith.constant 0 : index
    %77 = vector.load %arg6[%c0_7, %c0_8, %c0_9, %c0_10] : memref<1x1x8x128xf32, #tpu.memory_space<vmem>>, vector<1x1x8x128xf32>
    %78 = vector.shape_cast %77 : vector<1x1x8x128xf32> to vector<8x128xf32>
    %79 = arith.addf %78, %74 : vector<8x128xf32>
    %c0_11 = arith.constant 0 : index
    %c0_12 = arith.constant 0 : index
    %c0_13 = arith.constant 0 : index
    %c0_14 = arith.constant 0 : index
    %80 = vector.load %arg6[%c0_11, %c0_12, %c0_13, %c0_14] : memref<1x1x8x128xf32, #tpu.memory_space<vmem>>, vector<1x1x8x128xf32>
    %81 = vector.shape_cast %80 : vector<1x1x8x128xf32> to vector<8x128xf32>
    %82 = vector.shape_cast %79 : vector<8x128xf32> to vector<1x1x8x128xf32>
    tpu.vector_store %arg6[%c0_11, %c0_12, %c0_13, %c0_14], %82 {strides = array<i32>} : memref<1x1x8x128xf32, #tpu.memory_space<vmem>>, vector<1x1x8x128xf32>,
    %c0_15 = arith.constant 0 : index
    %c0_16 = arith.constant 0 : index
    %c0_17 = arith.constant 0 : index
    %c0_18 = arith.constant 0 : index
    %83 = vector.load %arg7[%c0_15, %c0_16, %c0_17, %c0_18] : memref<1x1x8x128xf32, #tpu.memory_space<vmem>>, vector<1x1x8x128xf32>
    %84 = vector.shape_cast %83 : vector<1x1x8x128xf32> to vector<8x128xf32>
    %85 = arith.addf %84, %76 : vector<8x128xf32>
    %c0_19 = arith.constant 0 : index
    %c0_20 = arith.constant 0 : index
    %c0_21 = arith.constant 0 : index
    %c0_22 = arith.constant 0 : index
    %86 = vector.load %arg7[%c0_19, %c0_20, %c0_21, %c0_22] : memref<1x1x8x128xf32, #tpu.memory_space<vmem>>, vector<1x1x8x128xf32>
    %87 = vector.shape_cast %86 : vector<1x1x8x128xf32> to vector<8x128xf32>
    %88 = vector.shape_cast %85 : vector<8x128xf32> to vector<1x1x8x128xf32>
    tpu.vector_store %arg7[%c0_19, %c0_20, %c0_21, %c0_22], %88 {strides = array<i32>} : memref<1x1x8x128xf32, #tpu.memory_space<vmem>>, vector<1x1x8x128xf32>,
    return
  }
  func.func @transform_0(%arg0: i32, %arg1: i32, %arg2: i32) -> (i32, i32, i32) {
    %c1_i32 = arith.constant 1 : i32
    %0 = arith.muli %arg1, %c1_i32 : i32
    %1 = arith.addi %0, %arg2 : i32
    %c0_i32 = arith.constant 0 : i32
    %c0_i32_0 = arith.constant 0 : i32
    return %arg0, %c0_i32, %1 : i32, i32, i32
  }
  func.func @transform_1(%arg0: i32, %arg1: i32, %arg2: i32) -> (i32, i32) {
    %c0_i32 = arith.constant 0 : i32
    %c0_i32_0 = arith.constant 0 : i32
    %c0_i32_1 = arith.constant 0 : i32
    return %c0_i32, %c0_i32_0 : i32, i32
  }
  func.func @transform_2(%arg0: i32, %arg1: i32, %arg2: i32) -> (i32, i32) {
    %c0_i32 = arith.constant 0 : i32
    %c0_i32_0 = arith.constant 0 : i32
    %c0_i32_1 = arith.constant 0 : i32
    return %c0_i32, %c0_i32_0 : i32, i32
  }
  func.func @transform_3(%arg0: i32, %arg1: i32, %arg2: i32) -> (i32, i32, i32, i32) {
    %c0_i32 = arith.constant 0 : i32
    %c0_i32_0 = arith.constant 0 : i32
    %c0_i32_1 = arith.constant 0 : i32
    return %arg0, %arg1, %c0_i32, %c0_i32_0 : i32, i32, i32, i32
  }
  func.func @transform_4(%arg0: i32, %arg1: i32, %arg2: i32) -> (i32, i32, i32, i32) {
    %c0_i32 = arith.constant 0 : i32
    %c0_i32_0 = arith.constant 0 : i32
    %c0_i32_1 = arith.constant 0 : i32
    return %arg0, %arg1, %c0_i32, %c0_i32_0 : i32, i32, i32, i32
  }
}

</mosaic_0001>

<bundles_post_ra>
// kernel: tpu_custom_call.1
= control target key start
LH: loop header
LB: loop body
LE: loop exit
PB: predicated region body
PF: predicated region fallthrough
CT: control target
= control target key end

     0   :  { %10 = vsyncpa [#allocation3], 0  ;;  %s1278_s0 = inlined_call_operand.hbm [shape: f32[2,8,1024], index: 0, kind: input, shape index: {}]   ;;  %s1279_s1 = inlined_call_operand.vmem [shape: f32[8,8], index: 1, kind: input, shape index: {}]   ;;  %s1280_s2 = inlined_call_operand.vmem [shape: f32[8,1], index: 2, kind: input, shape index: {}]   ;;  %s1281_s3 = inlined_call_operand.hbm [shape: f32[2,2,8,128], index: 3, kind: output, shape index: {0}]   ;;  %s1282_s4 = inlined_call_operand.hbm [shape: f32[2,2,8,128], index: 4, kind: output, shape index: {1}]  }
   0x1   :  { %12 = vsyncpa [#allocation3 + $0x1], 0 }
   0x2   :  { %13 = vsyncpa [#allocation4], 0 }
   0x3   :  { %15 = vsyncpa [#allocation4 + $0x1], 0 }
   0x4   :  { %16 = vsyncpa [#allocation7], 0 }
   0x5   :  { %18 = vsyncpa [#allocation7 + $0x1], 0  ;;  %s1002_s15 = smov 0   ;;  %s1004_s16 = smov 0  }
   0x6   :  { %s1006_s17 = smov 0   ;;  %s1008_s18 = smov 0  }
   0x7   :  { %s1010_s19 = smov 0   ;;  %s1012_s20 = smov 0  }
   0x8   :  { %s1014_s21 = smov 0   ;;  %s1016_s22 = smov 0  }
   0x9 LB: > { %s683_s23 = sadd.s32 4294967295, %s964_s22   ;;  %s684_s24 = sadd.s32 4294967294, %s964_s22   ;;  %s964_s22 = sphi %s1016_s22, %s24_s22   ;;  %s960_s21 = sphi %s1014_s21, %s1302_s21   ;;  %s956_s20 = sphi %s1012_s20, %s1301_s20   ;;  %s952_s19 = sphi %s1010_s19, %s1300_s19   ;;  %s948_s18 = sphi %s1008_s18, %s1299_s18   ;;  %s944_s17 = sphi %s1006_s17, %s1298_s17   ;;  %s940_s16 = sphi %s1004_s16, %s1297_s16   ;;  %s936_s15 = sphi %s1002_s15, %s1296_s15  }
   0xa   : > { %s39_s25 = sadd.s32 1, %s956_s20  ;;  %s43_s26 = sadd.s32 1, %s960_s21 }
   0xb   : > { %p41_p0 = scmp.ge.s32.totalorder %s39_s25, 2  ;;  %s54_s27 = sadd.s32 1, %s944_s17 }
   0xc   : > { %p61_p1 = scmp.ne.s32.totalorder %s944_s17, %s940_s16  ;;  %p62_p2 = scmp.eq.s32.totalorder %s964_s22, 0 }
   0xd   : > { %s1304_s25 = smov (%p41_p0, %s39_s25), 0  ;;  %s1306_s26 = smov (!%p41_p0, %s43_s26), %s960_s21 }
   0xe   : > { %s50_s28 = ssub.s32 %s956_s20, %s1304_s25  ;;  %p1055_p3 = por %p62_p2, %p61_p1 }
   0xf   : > { %p45_p4 = scmp.ge.s32.totalorder %s1306_s26, 2  ;;  %p67_p5 = scmp.ne.s32.totalorder %s940_s16, %s936_s15 }
  0x10   : > { %p68_p6 = scmp.eq.s32.totalorder %s683_s23, 0  ;;  %p135_p7 = scmp.eq.s32.totalorder %s683_s23, 3 }
  0x11   : > { %s1308_s26 = smov (%p45_p4, %s1306_s26), 0  ;;  %p141_p10 = scmp.eq.s32.totalorder %s684_s24, 3 }
  0x12   : > { %1286 = sst [smem:[#allocation11_spill]] %s1308_s26  ;;  %p1063_p8 = por %p68_p6, %p67_p5 }
  0x13   : > { %p1067_p9 = por %p135_p7, %p61_p1  ;;  %s49_s6 = ssub.s32 %s960_s21, %s1308_s26 }
  0x14   : > { %s51_s7 = sor.u32 %s50_s28, %s49_s6  ;;  %p1073_p12 = por %p141_p10, %p67_p5 }
  0x15   : > { %s1288_s5 = scalar_select %p1067_p9, 1, 0 }
  0x16   : > { %p52_p11 = scmp.eq.s32.totalorder %s51_s7, 0  ;;  %p720_p13 = scmp.lt.s32.totalorder %s964_s22, 4 }
  0x17   : > { %s1289_s8 = scalar_select %p1073_p12, 1, 0 }
  0x18   : > { %s195_s9 = sand.u32 1, %s944_s17   ;;  %s688_s12 = sshll.u32 %s956_s20, 2 }
  0x19   : > { %s1080_s10 = scalar_select %p52_p11, %s944_s17, %s54_s27  }
  0x1a   : > { %s687_s11 = sshll.u32 %s195_s9, 5  ;;  %s689_s13 = sshll.u32 %s960_s21, 3 }
  0x1b   : > { %s199_s14 = scalar_lea.vmem [#allocation2], %s687_s11  ;;  %s206_s26 = sadd.s32 %s689_s13, %s688_s12 }
  0x1c   : > { %s210_s23 = sshll.u32 %s199_s14, 4  ;;  %s690_s24 = sshll.u32 %s206_s26, 7  ;;  %s1084_s23 = int_to_ptr.vmem [resolvable:$true] %s210_s23 }
  0x1d   : > { %p1088_p0 = pnand %p720_p13, %p1055_p3  ;;  %s1095_s27 = scalar_lea.hbm %s1278_s0, %s690_s24 }
  0x1e   : > { %s196_s11 = scalar_lea.sflag [#allocation3], %s195_s9  ;;  %s804_s26 = scalar_lea.hbm %s1095_s27, 512 }
  0x1f   : > { %p805_p4 = scmp.ne.s32.totalorder %s1095_s27, %s804_s26  ;;  %p806_p3 = pneg %p1088_p0 }
  0x20   : > { %s809_s13 = scalar_lea.hbm %s1278_s0, 2048  ;;  %p810_p7 = scmp.lt.u32.totalorder %s1095_s27, %s1278_s0 }
  0x21   : > { %p807_p5 = pnand %p806_p3, %p805_p4  ;;  %p811_p10 = scmp.lt.u32.totalorder %s809_s13, %s804_s26 }
  0x22   : > { %p813_p13 = scmp.lt.u32.totalorder %s804_s26, %s1095_s27 }
  0x23   : > { %p808_p6 = pneg %p807_p5  ;;  %p812_p11 = por %p811_p10, %p810_p7 }
  0x25   : > { %p814_p1 = por %p813_p13, %p812_p11 }
  0x27   : > { %p815_p2 = pnand %p814_p1, %p808_p6 }
  0x29   : > { %818 = shalt.err (!%p815_p2)
}
  0x2a   : > { %s819_s9 = scalar_lea.vmem %s1084_s23, 512  ;;  %s966_s6 = smov [#allocation2]  }
  0x2b   : > { %p820_p4 = scmp.ne.s32.totalorder %s1084_s23, %s819_s9  ;;  %s824_s7 = sshll.u32 %s966_s6, 4  ;;  %s825_s7 = int_to_ptr.vmem [resolvable:$false] %s824_s7 }
  0x2c   : > { %s826_s29 = scalar_lea.vmem %s825_s7, 1024  ;;  %p827_p9 = scmp.lt.s32.totalorder %s1084_s23, %s825_s7 }
  0x2d   : > { %p822_p5 = pnand %p820_p4, %p806_p3  ;;  %p828_p7 = scmp.lt.s32.totalorder %s826_s29, %s819_s9 }
  0x2f   : > { %p823_p12 = pneg %p822_p5  ;;  %p829_p10 = por %p828_p7, %p827_p9 }
  0x31   : > { %p830_p11 = pnand %p829_p10, %p823_p12 }
  0x33   : > { %833 = shalt.err (!%p830_p11)
}
  0x34   : > { %712 = dma.hbm_to_vmem [thread:$0]  (!%p1088_p0), %s1095_s27, 512, %s1084_s23, %s196_s11  }
  0x35   : > { %p1291_p1 = scmp.lt.s32.totalorder %s964_s22, 5  ;;  %p1292_p2 = scmp.ge.s32.totalorder %s964_s22, 1 }
  0x37   : > { %p216_p3 = pnand %p1292_p2, %p1291_p1 }
  0x38   : > { %s1129_s26 = sand.u32 (!%p216_p3), 1, %s940_s16  }
  0x39   : > { %219 = sbr.rel (%p216_p3) target bundleno = 268 (0x10c), region = 32  ;;  %s692_s12 = sshll.u32 (!%p216_p3), %s1129_s26, 5 }
  0x3a   : > { %s222_s13 = scalar_lea.sflag (!%p216_p3), [#allocation3], %s1129_s26  ;;  %s1133_s14 = scalar_lea.vmem (!%p216_p3), [#allocation2], %s692_s12 }
  0x40   : > { %923 = dma.done.wait (%p1063_p8), %s222_s13, 512  }
  0x41   : > { %925 = vsyncadd (%p1063_p8), %s222_s13, 4294966784  ;;  %v967_v0 = vmov 2   ;;  %v968_v1 = vmov 0   ;;  %v263_v2 = vld [vmem:[%s1279_s1] sm:$0xff]  ;;  %v969_v3 = vmov 3   ;;  %v970_v4 = vmov 1  }
  0x42   : > { %797 = vset.pattern.permute.xlu1 %v967_v0  ;;  %795 = vset.pattern.permute.xlu0 %v968_v1  ;;  %v971_v5 = vmov 4   ;;  %v972_v6 = vmov 5   ;;  %v264_v7 = vld [vmem:[%s1280_s2] sm:$0xff]  ;;  %v973_v8 = vmov 6   ;;  %v974_v9 = vmov 7   ;;  %v1149_v15 = vld [vmem:[%s1133_s14 + $0x8] sm:$0xff] }
  0x43   : > { %319 = vperm.xlu1 %797, %v263_v2   ;;  %271 = vperm.xlu0 %795, %v263_v2   ;;  %v274_v10 = vlaneseq  ;;  %v1146_v14 = vld [vmem:[%s1133_s14] sm:$0xff]  ;;  %v1152_v16 = vld [vmem:[%s1133_s14 + $0x10] sm:$0xff]  ;;  %v1155_v17 = vld [vmem:[%s1133_s14 + $0x18] sm:$0xff]  ;;  %s697_s11 = sshll.u32 %s952_s19, 1  ;;  %s693_s24 = sshll.u32 %s1129_s26, 3 }
  0x44   : > { %s540_s9 = sadd.s32 %s948_s18, %s697_s11  ;;  %s247_s7 = scalar_lea.vmem [#allocation5], %s693_s24 }
  0x45   : > { %v275_v11 = vshrl.u32 %v274_v10, 7  ;;  %s698_s6 = sshll.u32 %s540_s9, 7  ;;  %s544_s29 = sshll.u32 %s247_s7, 4  ;;  %s1197_s29 = int_to_ptr.vmem [resolvable:$true] %s544_s29 }
  0x46   : > { %s254_s19 = scalar_lea.vmem [#allocation6], %s693_s24  ;;  %s1195_s23 = scalar_lea.hbm %s1281_s3, %s698_s6 }
  0x47   : > { %798 = vset.pattern.permute.xlu1 %v969_v3  ;;  %796 = vset.pattern.permute.xlu0 %v970_v4  ;;  %v324_v12 = vsub.s32 2, %v275_v11  ;;  %v276_v13 = vsub.s32 0, %v275_v11  ;;  %v352_v18 = vsub.s32 3, %v275_v11  ;;  %v300_v20 = vsub.s32 1, %v275_v11  ;;  %s559_s12 = sshll.u32 %s254_s19, 4  ;;  %s1202_s30 = scalar_lea.hbm %s1282_s4, %s698_s6  ;;  %s1204_s12 = int_to_ptr.vmem [resolvable:$true] %s559_s12 }
  0x48   : > { %347 = vperm.xlu1 %798, %v263_v2   ;;  %295 = vperm.xlu0 %796, %v263_v2   ;;  %v380_v25 = vsub.s32 4, %v275_v11  ;;  %v408_v29 = vsub.s32 5, %v275_v11  ;;  %v436_v37 = vsub.s32 6, %v275_v11  ;;  %v464_v51 = vsub.s32 7, %v275_v11  ;;  %s524_s27 = scalar_lea.sflag [#allocation4], %s1129_s26  ;;  %s834_s11 = scalar_lea.vmem %s1197_s29, 128 }
  0x49   : > { %v325_v21 = vrot.slane %v1146_v14, %v324_v12  ;;  %v329_v22 = vrot.slane %v1149_v15, %v324_v12  ;;  %v277_v23 = vrot.slane %v1146_v14, %v276_v13  ;;  %v333_v26 = vrot.slane %v1152_v16, %v324_v12  ;;  %p835_p8 = scmp.ne.s32.totalorder %s1197_s29, %s834_s11  ;;  %p1293_p9 = scmp.ne.s32.totalorder %s1288_s5, 0 }
  0x4a   : > { %v337_v27 = vrot.slane %v1155_v17, %v324_v12  ;;  %v281_v28 = vrot.slane %v1149_v15, %v276_v13  ;;  %v285_v30 = vrot.slane %v1152_v16, %v276_v13  ;;  %v289_v31 = vrot.slane %v1155_v17, %v276_v13  ;;  %s975_s24 = smov [#allocation5]  }
  0x4b   : > { %v353_v32 = vrot.slane %v1146_v14, %v352_v18  ;;  %v357_v33 = vrot.slane %v1149_v15, %v352_v18  ;;  %v361_v34 = vrot.slane %v1152_v16, %v352_v18  ;;  %v365_v35 = vrot.slane %v1155_v17, %v352_v18  ;;  %p836_p12 = pnand %p835_p8, %p1293_p9  ;;  %s838_s9 = sshll.u32 %s975_s24, 4  ;;  %s839_s9 = int_to_ptr.vmem [resolvable:$false] %s838_s9 }
  0x4c   : > { %799 = vset.pattern.permute.xlu1 %v971_v5  ;;  %800 = vset.pattern.permute.xlu0 %v972_v6  ;;  %v301_v36 = vrot.slane %v1146_v14, %v300_v20  ;;  %v305_v39 = vrot.slane %v1149_v15, %v300_v20  ;;  %v309_v40 = vrot.slane %v1152_v16, %v300_v20  ;;  %s840_s13 = scalar_lea.vmem %s839_s9, 256  ;;  %p841_p6 = scmp.lt.s32.totalorder %s1197_s29, %s839_s9 }
  0x4d   : > { %375 = vperm.xlu1 %799, %v263_v2   ;;  %403 = vperm.xlu0 %800, %v263_v2   ;;  %v313_v41 = vrot.slane %v1155_v17, %v300_v20  ;;  %v381_v42 = vrot.slane %v1146_v14, %v380_v25  ;;  %v385_v43 = vrot.slane %v1149_v15, %v380_v25  ;;  %p837_p0 = pneg %p836_p12  ;;  %p842_p13 = scmp.lt.s32.totalorder %s840_s13, %s834_s11 }
  0x4e   : > { %v389_v44 = vrot.slane %v1152_v16, %v380_v25  ;;  %v393_v45 = vrot.slane %v1155_v17, %v380_v25  ;;  %v409_v46 = vrot.slane %v1146_v14, %v408_v29  ;;  %v413_v48 = vrot.slane %v1149_v15, %v408_v29 }
  0x4f   : > { %v417_v49 = vrot.slane %v1152_v16, %v408_v29  ;;  %v421_v50 = vrot.slane %v1155_v17, %v408_v29  ;;  %v437_v52 = vrot.slane %v1146_v14, %v436_v37  ;;  %v441_v53 = vrot.slane %v1149_v15, %v436_v37  ;;  %p843_p4 = por %p842_p13, %p841_p6 }
  0x50   : > { %v445_v54 = vrot.slane %v1152_v16, %v436_v37  ;;  %v449_v55 = vrot.slane %v1155_v17, %v436_v37  ;;  %v473_v3 = vrot.slane %v1152_v16, %v464_v51  ;;  %v477_v4 = vrot.slane %v1155_v17, %v464_v51 }
  0x51   : > { %801 = vset.pattern.permute.xlu1 %v973_v8  ;;  %803 = vset.pattern.permute.xlu0 %v968_v1  ;;  %v465_v1 = vrot.slane %v1146_v14, %v464_v51  ;;  %p844_p5 = pnand %p843_p4, %p837_p0 }
  0x52   : > { %431 = vperm.xlu1 %801, %v263_v2   ;;  %492 = vperm.xlu0 %803, %v264_v7  }
  0x56   : > { %802 = vset.pattern.permute.xlu1 %v974_v9 }
  0x57   : > { %459 = vperm.xlu1 %802, %v263_v2   ;;  %v469_v2 = vrot.slane %v1149_v15, %v464_v51 }
  0xc2   : > { %v320_v19 = vpop.permute.xlu1 %319  ;;  %v272_v24 = vpop.permute.xlu0 %271 }
  0xc3   : > { %v338_v56 = vmul.f32 %v325_v21, %v320_v19  ;;  %v339_v57 = vmul.f32 %v329_v22, %v320_v19  ;;  %v340_v58 = vmul.f32 %v333_v26, %v320_v19  ;;  %v341_v59 = vmul.f32 %v337_v27, %v320_v19 }
  0xc4   : > { %v290_v60 = vmul.f32 %v277_v23, %v272_v24  ;;  %v291_v61 = vmul.f32 %v281_v28, %v272_v24  ;;  %v292_v62 = vmul.f32 %v285_v30, %v272_v24  ;;  %v293_v63 = vmul.f32 %v289_v31, %v272_v24 }
  0xc6   : > { %v342_v18 = vadd.f32 %v338_v56, %v290_v60  ;;  %v343_v19 = vadd.f32 %v339_v57, %v291_v61  ;;  %v344_v20 = vadd.f32 %v340_v58, %v292_v62  ;;  %v345_v21 = vadd.f32 %v341_v59, %v293_v63 }
  0xc7   : > { %v348_v38 = vpop.permute.xlu1 %347  ;;  %v296_v47 = vpop.permute.xlu0 %295 }
  0xc8   : > { %v366_v5 = vmul.f32 %v353_v32, %v348_v38  ;;  %v367_v6 = vmul.f32 %v357_v33, %v348_v38  ;;  %v368_v7 = vmul.f32 %v361_v34, %v348_v38  ;;  %v369_v8 = vmul.f32 %v365_v35, %v348_v38 }
  0xc9   : > { %v314_v9 = vmul.f32 %v301_v36, %v296_v47  ;;  %v315_v10 = vmul.f32 %v305_v39, %v296_v47  ;;  %v316_v11 = vmul.f32 %v309_v40, %v296_v47  ;;  %v317_v12 = vmul.f32 %v313_v41, %v296_v47 }
  0xcb   : > { %v370_v27 = vadd.f32 %v366_v5, %v314_v9  ;;  %v371_v28 = vadd.f32 %v367_v6, %v315_v10  ;;  %v372_v29 = vadd.f32 %v368_v7, %v316_v11  ;;  %v373_v30 = vadd.f32 %v369_v8, %v317_v12 }
  0xcc   : > { %v376_v0 = vpop.permute.xlu1 %375  ;;  %v404_v13 = vpop.permute.xlu0 %403 }
  0xcd   : > { %v394_v14 = vmul.f32 %v381_v42, %v376_v0  ;;  %v395_v22 = vmul.f32 %v385_v43, %v376_v0  ;;  %v396_v15 = vmul.f32 %v389_v44, %v376_v0  ;;  %v397_v23 = vmul.f32 %v393_v45, %v376_v0 }
  0xce   : > { %v422_v24 = vmul.f32 %v409_v46, %v404_v13  ;;  %v423_v17 = vmul.f32 %v413_v48, %v404_v13  ;;  %v424_v25 = vmul.f32 %v417_v49, %v404_v13  ;;  %v425_v26 = vmul.f32 %v421_v50, %v404_v13 }
  0xcf   : > { %v398_v35 = vadd.f32 %v394_v14, %v342_v18  ;;  %v399_v36 = vadd.f32 %v395_v22, %v343_v19  ;;  %v400_v37 = vadd.f32 %v396_v15, %v344_v20  ;;  %v401_v38 = vadd.f32 %v397_v23, %v345_v21 }
  0xd0   : > { %v426_v40 = vadd.f32 %v422_v24, %v370_v27  ;;  %v427_v41 = vadd.f32 %v423_v17, %v371_v28  ;;  %v428_v42 = vadd.f32 %v424_v25, %v372_v29  ;;  %v429_v43 = vadd.f32 %v425_v26, %v373_v30 }
  0xd1   : > { %v432_v16 = vpop.permute.xlu1 %431  ;;  %v493_v56 = vpop.permute.xlu0 %492 }
  0xd2   : > { %v450_v31 = vmul.f32 %v437_v52, %v432_v16  ;;  %v451_v32 = vmul.f32 %v441_v53, %v432_v16  ;;  %v452_v33 = vmul.f32 %v445_v54, %v432_v16  ;;  %v453_v34 = vmul.f32 %v449_v55, %v432_v16 }
  0xd4   : > { %v454_v48 = vadd.f32 %v450_v31, %v398_v35  ;;  %v455_v49 = vadd.f32 %v451_v32, %v399_v36  ;;  %v456_v50 = vadd.f32 %v452_v33, %v400_v37  ;;  %v457_v51 = vadd.f32 %v453_v34, %v401_v38 }
  0xd6   : > { %v460_v39 = vpop.permute.xlu1 %459 }
  0xd7   : > { %v478_v44 = vmul.f32 %v465_v1, %v460_v39  ;;  %v479_v45 = vmul.f32 %v469_v2, %v460_v39  ;;  %v480_v46 = vmul.f32 %v473_v3, %v460_v39  ;;  %v481_v47 = vmul.f32 %v477_v4, %v460_v39 }
  0xd9   : > { %v482_v52 = vadd.f32 %v478_v44, %v426_v40  ;;  %v483_v53 = vadd.f32 %v479_v45, %v427_v41  ;;  %v484_v54 = vadd.f32 %v480_v46, %v428_v42  ;;  %v485_v55 = vadd.f32 %v481_v47, %v429_v43 }
  0xdb   : > { %v486_v57 = vadd.f32 %v482_v52, %v454_v48  ;;  %v487_v58 = vadd.f32 %v483_v53, %v455_v49  ;;  %v488_v59 = vadd.f32 %v484_v54, %v456_v50  ;;  %v489_v60 = vadd.f32 %v485_v55, %v457_v51 }
  0xdd   : > { %v495_v61 = vadd.f32 %v493_v56, %v486_v57  ;;  %v496_v62 = vadd.f32 %v493_v56, %v487_v58  ;;  %v497_v63 = vadd.f32 %v493_v56, %v488_v59  ;;  %v498_v0 = vadd.f32 %v493_v56, %v489_v60 }
  0xdf   : > { %v503_v1 = vmul.f32 %v495_v61, %v495_v61  ;;  %v504_v2 = vmul.f32 %v496_v62, %v496_v62  ;;  %v511_v3 = vadd.f32 %v496_v62, %v495_v61  ;;  %v505_v4 = vmul.f32 %v497_v63, %v497_v63 }
  0xe0   : > { %v506_v7 = vmul.f32 %v498_v0, %v498_v0 }
  0xe1   : > { %v512_v5 = vadd.f32 %v504_v2, %v503_v1  ;;  %v513_v6 = vadd.f32 %v511_v3, %v497_v63 }
  0xe3   : > { %v514_v8 = vadd.f32 %v512_v5, %v505_v4  ;;  %v515_v9 = vadd.f32 %v513_v6, %v498_v0 }
  0xe5   : > { %v516_v10 = vadd.f32 %v514_v8, %v506_v7  ;;  %519 = vst [vmem:[%s247_s7] sm:$0xff] %v515_v9 }
  0xe7   : > { %522 = vst [vmem:[%s254_s19] sm:$0xff] %v516_v10 }
  0xe8   : > { %847 = shalt.err (!%p844_p5)
}
  0xe9   : > { %s848_s6 = scalar_lea.hbm %s1195_s23, 128  ;;  %s852_s14 = scalar_lea.hbm %s1281_s3, 512 }
  0xea   : > { %p849_p7 = scmp.ne.s32.totalorder %s1195_s23, %s848_s6  ;;  %p853_p1 = scmp.lt.u32.totalorder %s1195_s23, %s1281_s3 }
  0xeb   : > { %p854_p2 = scmp.lt.u32.totalorder %s852_s14, %s848_s6  ;;  %p856_p8 = scmp.lt.u32.totalorder %s848_s6, %s1195_s23 }
  0xec   : > { %p850_p10 = pnand %p849_p7, %p1293_p9 }
  0xed   : > { %p855_p3 = por %p854_p2, %p853_p1 }
  0xee   : > { %p851_p11 = pneg %p850_p10 }
  0xef   : > { %p857_p12 = por %p856_p8, %p855_p3 }
  0xf1   : > { %p858_p0 = pnand %p857_p12, %p851_p11 }
  0xf3   : > { %861 = shalt.err (!%p858_p0)
}
  0xf4   : > { %705 = dma.vmem_to_hbm [thread:$0]  (%p1293_p9), %s1197_s29, 128, %s1195_s23, %s524_s27  }
  0xf5   : > { %s529_s11 = scalar_lea.sflag [#allocation7], %s1129_s26  ;;  %s862_s24 = scalar_lea.vmem %s1204_s12, 128 }
  0xf6   : > { %p863_p6 = scmp.ne.s32.totalorder %s1204_s12, %s862_s24  ;;  %s976_s9 = smov [#allocation6]  }
  0xf7   : > { %s866_s13 = sshll.u32 %s976_s9, 4  ;;  %s867_s13 = int_to_ptr.vmem [resolvable:$false] %s866_s13 }
  0xf8   : > { %p864_p13 = pnand %p863_p6, %p1293_p9  ;;  %s868_s6 = scalar_lea.vmem %s867_s13, 256 }
  0xf9   : > { %p869_p5 = scmp.lt.s32.totalorder %s1204_s12, %s867_s13  ;;  %p870_p7 = scmp.lt.s32.totalorder %s868_s6, %s862_s24 }
  0xfa   : > { %p865_p4 = pneg %p864_p13 }
  0xfb   : > { %p871_p10 = por %p870_p7, %p869_p5 }
  0xfd   : > { %p872_p11 = pnand %p871_p10, %p865_p4 }
  0xff   : > { %875 = shalt.err (!%p872_p11)
}
 0x100   : > { %s876_s26 = scalar_lea.hbm %s1202_s30, 128  ;;  %s880_s27 = scalar_lea.hbm %s1282_s4, 512 }
 0x101   : > { %p877_p1 = scmp.ne.s32.totalorder %s1202_s30, %s876_s26  ;;  %p881_p8 = scmp.lt.u32.totalorder %s1202_s30, %s1282_s4 }
 0x102   : > { %p882_p12 = scmp.lt.u32.totalorder %s880_s27, %s876_s26  ;;  %p884_p6 = scmp.lt.u32.totalorder %s876_s26, %s1202_s30 }
 0x103   : > { %p878_p2 = pnand %p877_p1, %p1293_p9 }
 0x104   : > { %p883_p0 = por %p882_p12, %p881_p8 }
 0x105   : > { %p879_p3 = pneg %p878_p2 }
 0x106   : > { %p885_p13 = por %p884_p6, %p883_p0 }
 0x108   : > { %p886_p4 = pnand %p885_p13, %p879_p3 }
 0x10a   : > { %889 = shalt.err (!%p886_p4)
}
 0x10b   : > { %706 = dma.vmem_to_hbm [thread:$0]  (%p1293_p9), %s1204_s12, 128, %s1202_s30, %s529_s11  }
 0x10c PF: > { %p721_p5 = scmp.ge.s32.totalorder %s964_s22, 2  ;;  %s571_s14 = sand.u32 1, %s936_s15  }
 0x10d   : > { %p1294_p7 = scmp.ne.s32.totalorder %s1289_s8, 0  ;;  %s572_s18 = scalar_lea.sflag [#allocation4], %s571_s14 }
 0x10f   : > { %p714_p10 = pnand %p721_p5, %p1294_p7 }
 0x111   : > { %927 = dma.done.wait (!%p714_p10), %s572_s18, 128  }
 0x112   : > { %929 = vsyncadd (!%p714_p10), %s572_s18, 4294967168  ;;  %s581_s28 = scalar_lea.sflag [#allocation7], %s571_s14 }
 0x113   : > { %931 = dma.done.wait (!%p714_p10), %s581_s28, 128  }
 0x114   : > { %933 = vsyncadd (!%p714_p10), %s581_s28, 4294967168  ;;  %s24_s22 = sadd.s32 1, %s964_s22   ;;  %s1295_s5 = sld [smem:[#allocation11_spill]] }
 0x115   : > { %p21_p11 = scmp.ge.s32.totalorder %s24_s22, 6   ;;  %s1296_s15 = smov %s940_s16 }
 0x116   : > { %s1297_s16 = smov %s944_s17  ;;  %s1298_s17 = smov %s1080_s10 }
 0x117   : > { %s1299_s18 = smov %s956_s20  ;;  %s1300_s19 = smov %s960_s21 }
 0x118   : > { %s1301_s20 = smov %s1304_s25  ;;  %23 = sbr.rel (!%p21_p11) target bundleno = 9 (0x9), region = 98 }
 0x11a   : > { %s1302_s21 = smov %s1295_s5 }
 0x11f   :  { %586 = vsyncpa [#allocation3], 1 }
 0x120   :  { %588 = vsyncpa [#allocation3 + $0x1], 1 }
 0x121   :  { %589 = vsyncpa [#allocation4], 1 }
 0x122   :  { %591 = vsyncpa [#allocation4 + $0x1], 1 }
 0x123   :  { %592 = vsyncpa [#allocation7], 1 }
 0x124   :  { %594 = vsyncpa [#allocation7 + $0x1], 1 }

</bundles_post_ra>
